<compile_context>
chip_gen: v5e
topology: v5e:2x2
jax: 0.10.0
libtpu: 0.0.40
codegen_flags: <defaults>
</compile_context>

<pallas_src>
import jax
import jax.numpy as jnp
from jax.experimental import pallas as pl
from jax.experimental.pallas import tpu as pltpu


# ----------------------------------------------------------------------------
# Fused kernel: global avg/max pool + fc1 + ReLU + fc2 + add + sigmoid
# (+ optional x * gate).
# ----------------------------------------------------------------------------
def _channel_attention_kernel(x_ref, w1t_ref, w2t_ref, *out_refs):
    # x_ref:   (B, C, HW)  full tensor, HW on the lane axis
    # w1t_ref: (C, Cr)     fc1 weight, pre-transposed
    # w2t_ref: (Cr, C)     fc2 weight, pre-transposed
    # out_refs: (gate_ref,)                       gate_ref: (B, C)
    #        or (gate_ref, scaled_ref)            scaled_ref: (B, C, HW)
    x = x_ref[...]
    B = x.shape[0]
    inv_hw = jnp.float32(1.0 / x.shape[-1])

    xf = x.astype(jnp.float32)
    # Global pools over the spatial plane (lane-axis reductions on the XLU).
    avg = jnp.sum(xf, axis=-1) * inv_hw                          # (B, C)
    mx = jnp.max(xf, axis=-1)                                    # (B, C)

    # Both branches + both batch rows as one lane-dense matmul pair (MXU).
    pooled = jnp.concatenate([avg, mx], axis=0)                  # (2B, C)
    h = jnp.maximum(
        jnp.dot(pooled, w1t_ref[...], preferred_element_type=jnp.float32),
        0.0)                                                     # (2B, Cr)
    y = jnp.dot(h, w2t_ref[...], preferred_element_type=jnp.float32)  # (2B, C)

    gate = jax.nn.sigmoid(y[:B] + y[B:])                         # (B, C)

    gate_ref = out_refs[0]
    gate_ref[...] = gate.astype(gate_ref.dtype)

    if len(out_refs) == 2:
        # Fused downstream consumer: x is already in VMEM, so applying the
        # gate here avoids a second HBM round trip over x.
        scaled_ref = out_refs[1]
        scaled_ref[...] = (xf * gate[:, :, None]).astype(scaled_ref.dtype)


# ----------------------------------------------------------------------------
# Wrapper
# ----------------------------------------------------------------------------
def channel_attention(x, fc1_w, fc2_w, *, apply_to_x=False):
    """ChannelAttention forward.

    x:      (B, C, H, W)
    fc1_w:  (C//16, C, 1, 1)   (PyTorch Conv2d weight layout, bias=False)
    fc2_w:  (C, C//16, 1, 1)
    Returns gate of shape (B, C, 1, 1); if apply_to_x, returns
    (x * gate of shape (B, C, H, W), gate).
    """
    B, C, H, W = x.shape
    Cr = fc1_w.shape[0]
    assert Cr >= 1 and fc1_w.shape[1] == C and fc2_w.shape[:2] == (C, Cr)
    HW = H * W

    xf = x.reshape(B, C, HW)                          # contiguous, lane-dense
    w1t = fc1_w.reshape(Cr, C).T.astype(jnp.float32)  # (C, Cr)
    w2t = fc2_w.reshape(C, Cr).T.astype(jnp.float32)  # (Cr, C)

    out_shape = [jax.ShapeDtypeStruct((B, C), x.dtype)]
    out_specs = [pl.BlockSpec((B, C), lambda i: (0, 0))]
    if apply_to_x:
        out_shape.append(jax.ShapeDtypeStruct((B, C, HW), x.dtype))
        out_specs.append(pl.BlockSpec((B, C, HW), lambda i: (0, 0, 0)))

    outs = pl.pallas_call(
        _channel_attention_kernel,
        out_shape=tuple(out_shape),
        grid=(1,),
        in_specs=[
            pl.BlockSpec((B, C, HW), lambda i: (0, 0, 0)),
            pl.BlockSpec((C, Cr), lambda i: (0, 0)),
            pl.BlockSpec((Cr, C), lambda i: (0, 0)),
        ],
        out_specs=tuple(out_specs),
        compiler_params=pltpu.CompilerParams(
            dimension_semantics=("arbitrary",)),
    )(xf, w1t, w2t)

    gate = outs[0].reshape(B, C, 1, 1)
    if apply_to_x:
        return outs[1].reshape(B, C, H, W), gate
    return gate


# ----------------------------------------------------------------------------
# Pure-JAX reference (correctness check only)
# ----------------------------------------------------------------------------
def channel_attention_ref(x, fc1_w, fc2_w):
    B, C, H, W = x.shape
    Cr = fc1_w.shape[0]
    w1 = fc1_w.reshape(Cr, C).astype(jnp.float32)
    w2 = fc2_w.reshape(C, Cr).astype(jnp.float32)
    xf = x.astype(jnp.float32)
    avg = xf.mean(axis=(2, 3))                                    # (B, C)
    mx = xf.max(axis=(2, 3))                                      # (B, C)

    def mlp(v):
        return jnp.maximum(v @ w1.T, 0.0) @ w2.T

    out = jax.nn.sigmoid(mlp(avg) + mlp(mx))
    return out.reshape(B, C, 1, 1).astype(x.dtype)


if __name__ == "__main__":
    key = jax.random.PRNGKey(0)
    kx, k1, k2 = jax.random.split(key, 3)

    # in_planes must be >= 16 because the module hardcodes in_planes // 16.
    B, C, H, W = 2, 64, 16, 16
    Cr = C // 16

    x = jax.random.normal(kx, (B, C, H, W), jnp.float32)
    fc1_w = 0.1 * jax.random.normal(k1, (Cr, C, 1, 1), jnp.float32)
    fc2_w = 0.1 * jax.random.normal(k2, (C, Cr, 1, 1), jnp.float32)

    # 1) Gate only (matches the PyTorch module's forward exactly).
    gate = jax.jit(channel_attention)(x, fc1_w, fc2_w)
    jax.block_until_ready(gate)
    assert gate.shape == (B, C, 1, 1), gate.shape
    assert bool(jnp.all(jnp.isfinite(gate)))
    assert bool(jnp.all((gate > 0.0) & (gate < 1.0)))

    gate_ref = channel_attention_ref(x, fc1_w, fc2_w)
    assert jnp.allclose(gate, gate_ref, rtol=1e-4, atol=1e-5), (
        float(jnp.max(jnp.abs(gate - gate_ref))))

    # 2) Fused downstream consumer (x * gate), as DTUM uses the gate.
    scaled, gate2 = jax.jit(
        lambda a, b, c: channel_attention(a, b, c, apply_to_x=True)
    )(x, fc1_w, fc2_w)
    jax.block_until_ready(scaled)
    assert scaled.shape == x.shape
    assert jnp.allclose(gate2, gate_ref, rtol=1e-4, atol=1e-5)
    assert jnp.allclose(scaled, x * gate_ref, rtol=1e-4, atol=1e-5), (
        float(jnp.max(jnp.abs(scaled - x * gate_ref))))

    print("KERNEL_OK")
</pallas_src>

<mosaic_0001>
module attributes {stable_mosaic.version = 11 : i64} {
  func.func @_channel_attention_kernel(%arg0: i32, %arg1: memref<2x64x256xf32, #tpu.memory_space<vmem>>, %arg2: memref<64x4xf32, #tpu.memory_space<vmem>>, %arg3: memref<4x64xf32, #tpu.memory_space<vmem>>, %arg4: memref<2x64xf32, #tpu.memory_space<vmem>>) attributes {dimension_semantics = [#tpu.dimension_semantics<arbitrary>], iteration_bounds = array<i64: 1>, scalar_prefetch = 0 : i64, scratch_operands = 0 : i64, tpu.core_type = #tpu.core_type<tc>, window_params = [{pipeline_mode = #tpu.pipeline_mode<synchronous>, transform_indices = @transform_0, window_bounds = array<i64: 2, 64, 256>}, {pipeline_mode = #tpu.pipeline_mode<synchronous>, transform_indices = @transform_1, window_bounds = array<i64: 64, 4>}, {pipeline_mode = #tpu.pipeline_mode<synchronous>, transform_indices = @transform_2, window_bounds = array<i64: 4, 64>}, {pipeline_mode = #tpu.pipeline_mode<synchronous>, transform_indices = @transform_3, window_bounds = array<i64: 2, 64>}]} {
    %c0 = arith.constant 0 : index
    %c0_0 = arith.constant 0 : index
    %c0_1 = arith.constant 0 : index
    %0 = vector.load %arg1[%c0, %c0_0, %c0_1] : memref<2x64x256xf32, #tpu.memory_space<vmem>>, vector<2x64x256xf32>
    %cst = arith.constant dense<0.000000e+00> : vector<2x64xf32>
    %1 = vector.multi_reduction <add>, %0, %cst [2] : vector<2x64x256xf32> to vector<2x64xf32>
    %cst_2 = arith.constant 3.906250e-03 : f32
    %2 = vector.broadcast %cst_2 : f32 to vector<2x64xf32>
    %3 = arith.mulf %1, %2 : vector<2x64xf32>
    %cst_3 = arith.constant dense<0xFF800000> : vector<2x64xf32>
    %4 = vector.multi_reduction <maximumf>, %0, %cst_3 [2] : vector<2x64x256xf32> to vector<2x64xf32>
    %5 = tpu.concatenate %3, %4 in 0 : vector<2x64xf32>, vector<2x64xf32> -> vector<4x64xf32>
    %c0_4 = arith.constant 0 : index
    %c0_5 = arith.constant 0 : index
    %6 = vector.load %arg2[%c0_4, %c0_5] : memref<64x4xf32, #tpu.memory_space<vmem>>, vector<64x4xf32>
    %cst_6 = arith.constant dense<0.000000e+00> : vector<4x4xf32>
    %7 = tpu.matmul %5, %6, %cst_6 {dimension_numbers = #tpu.dot_dimension_numbers<[1], [0], [0], [1], [0, 0, 1, 1], [], []>} : vector<4x64xf32>, vector<64x4xf32>, vector<4x4xf32> -> vector<4x4xf32>
    %cst_7 = arith.constant 0.000000e+00 : f32
    %8 = vector.broadcast %cst_7 : f32 to vector<4x4xf32>
    %9 = arith.maximumf %7, %8 : vector<4x4xf32>
    %c0_8 = arith.constant 0 : index
    %c0_9 = arith.constant 0 : index
    %10 = vector.load %arg3[%c0_8, %c0_9] : memref<4x64xf32, #tpu.memory_space<vmem>>, vector<4x64xf32>
    %cst_10 = arith.constant dense<0.000000e+00> : vector<4x64xf32>
    %11 = tpu.matmul %9, %10, %cst_10 {dimension_numbers = #tpu.dot_dimension_numbers<[1], [0], [0], [1], [0, 0, 1, 1], [], []>} : vector<4x4xf32>, vector<4x64xf32>, vector<4x64xf32> -> vector<4x64xf32>
    %12 = vector.extract_strided_slice %11 {offsets = [0, 0], sizes = [2, 64], strides = [1, 1]} : vector<4x64xf32> to vector<2x64xf32>
    %13 = vector.extract_strided_slice %11 {offsets = [2, 0], sizes = [2, 64], strides = [1, 1]} : vector<4x64xf32> to vector<2x64xf32>
    %14 = arith.addf %12, %13 : vector<2x64xf32>
    %15 = arith.negf %14 : vector<2x64xf32>
    %16 = math.exp %15 : vector<2x64xf32>
    %cst_11 = arith.constant 1.000000e+00 : f32
    %17 = vector.broadcast %cst_11 : f32 to vector<2x64xf32>
    %18 = arith.addf %17, %16 : vector<2x64xf32>
    %19 = arith.divf %17, %18 : vector<2x64xf32>
    %c0_12 = arith.constant 0 : index
    %c0_13 = arith.constant 0 : index
    %20 = vector.load %arg4[%c0_12, %c0_13] : memref<2x64xf32, #tpu.memory_space<vmem>>, vector<2x64xf32>
    tpu.vector_store %arg4[%c0_12, %c0_13], %19 {strides = array<i32>} : memref<2x64xf32, #tpu.memory_space<vmem>>, vector<2x64xf32>,
    return
  }
  func.func @transform_0(%arg0: i32) -> (i32, i32, i32) {
    %c0_i32 = arith.constant 0 : i32
    %c0_i32_0 = arith.constant 0 : i32
    %c0_i32_1 = arith.constant 0 : i32
    %c0_i32_2 = arith.constant 0 : i32
    return %c0_i32, %c0_i32_0, %c0_i32_1 : i32, i32, i32
  }
  func.func @transform_1(%arg0: i32) -> (i32, i32) {
    %c0_i32 = arith.constant 0 : i32
    %c0_i32_0 = arith.constant 0 : i32
    %c0_i32_1 = arith.constant 0 : i32
    return %c0_i32, %c0_i32_0 : i32, i32
  }
  func.func @transform_2(%arg0: i32) -> (i32, i32) {
    %c0_i32 = arith.constant 0 : i32
    %c0_i32_0 = arith.constant 0 : i32
    %c0_i32_1 = arith.constant 0 : i32
    return %c0_i32, %c0_i32_0 : i32, i32
  }
  func.func @transform_3(%arg0: i32) -> (i32, i32) {
    %c0_i32 = arith.constant 0 : i32
    %c0_i32_0 = arith.constant 0 : i32
    %c0_i32_1 = arith.constant 0 : i32
    return %c0_i32, %c0_i32_0 : i32, i32
  }
}

</mosaic_0001>

<bundles_post_ra>
// kernel: channel_attention.1
= control target key start
LH: loop header
LB: loop body
LE: loop exit
PB: predicated region body
PF: predicated region fallthrough
CT: control target
= control target key end

     0   :  { %s676_s0 = inlined_call_operand.vmem [shape: f32[2,64,256], index: 0, kind: input, shape index: {}]   ;;  %s677_s1 = inlined_call_operand.vmem [shape: f32[64,4], index: 1, kind: input, shape index: {}]   ;;  %s678_s2 = inlined_call_operand.vmem [shape: f32[4,64], index: 2, kind: input, shape index: {}]   ;;  %s679_s3 = inlined_call_operand.hbm [shape: f32[2,64], index: 3, kind: output, shape index: {}]  }
   0x1   :  { %v31_v0 = vld [vmem:[%s676_s0 + $0x80] sm:$0xff]  ;;  %v32_v1 = vld [vmem:[%s676_s0 + $0x88] sm:$0xff]  ;;  %v33_v9 = vld [vmem:[%s676_s0 + $0x90] sm:$0xff] }
   0x2   :  { %v19_v2 = vld [vmem:[%s676_s0 + $0x20] sm:$0xff]  ;;  %v71_v3 = vadd.f32 %v32_v1, %v31_v0  ;;  %v20_v4 = vld [vmem:[%s676_s0 + $0x28] sm:$0xff]  ;;  %v34_v10 = vld [vmem:[%s676_s0 + $0x98] sm:$0xff] }
   0x3   :  { %v15_v5 = vld [vmem:[%s676_s0] sm:$0xff]  ;;  %v16_v6 = vld [vmem:[%s676_s0 + $0x8] sm:$0xff]  ;;  %v53_v7 = vadd.f32 %v20_v4, %v19_v2  ;;  %v17_v13 = vld [vmem:[%s676_s0 + $0x10] sm:$0xff]  ;;  %v74_v15 = vadd.f32 %v34_v10, %v33_v9 }
   0x4   :  { %v47_v8 = vadd.f32 %v16_v6, %v15_v5  ;;  %72 = vadd.xlane.f32.xlu1 %v71_v3  ;;  %v35_v11 = vld [vmem:[%s676_s0 + $0xa0] sm:$0xff]  ;;  %v36_v12 = vld [vmem:[%s676_s0 + $0xa8] sm:$0xff]  ;;  %v18_v14 = vld [vmem:[%s676_s0 + $0x18] sm:$0xff] }
   0x5   :  { %54 = vadd.xlane.f32.xlu2 %v53_v7 }
   0x6   :  { %48 = vadd.xlane.f32.xlu0 %v47_v8 }
   0x7   :  { %8 = vsyncpa [#allocation3], 0  ;;  %v77_v16 = vadd.f32 %v36_v12, %v35_v11  ;;  %v50_v17 = vadd.f32 %v18_v14, %v17_v13  ;;  %v37_v18 = vld [vmem:[%s676_s0 + $0xb0] sm:$0xff]  ;;  %v38_v19 = vld [vmem:[%s676_s0 + $0xb8] sm:$0xff]  ;;  %v111_v23 = vmax.f32 %v15_v5, %v16_v6  ;;  %v135_v25 = vmax.f32 %v31_v0, %v32_v1  ;;  %s369_s14 = sshll.u32 %s679_s3, 4  ;;  %s370_s14 = int_to_ptr.hbm [resolvable:$true] %s369_s14 }
   0x8   :  { %v21_v20 = vld [vmem:[%s676_s0 + $0x30] sm:$0xff]  ;;  %v22_v21 = vld [vmem:[%s676_s0 + $0x38] sm:$0xff]  ;;  %v80_v22 = vadd.f32 %v38_v19, %v37_v18  ;;  %v138_v26 = vmax.f32 %v33_v9, %v34_v10  ;;  %v114_v27 = vmax.f32 %v17_v13, %v18_v14  ;;  %v39_v28 = vld [vmem:[%s676_s0 + $0xc0] sm:$0xff]  ;;  %v117_v33 = vmax.f32 %v19_v2, %v20_v4 }
   0x9   :  { %v56_v24 = vadd.f32 %v22_v21, %v21_v20  ;;  %v40_v29 = vld [vmem:[%s676_s0 + $0xc8] sm:$0xff]  ;;  %v23_v30 = vld [vmem:[%s676_s0 + $0x40] sm:$0xff]  ;;  %v25_v35 = vld [vmem:[%s676_s0 + $0x50] sm:$0xff]  ;;  %v141_v41 = vmax.f32 %v35_v11, %v36_v12  ;;  %v144_v44 = vmax.f32 %v37_v18, %v38_v19  ;;  %v120_v46 = vmax.f32 %v21_v20, %v22_v21 }
   0xa   :  { %v24_v31 = vld [vmem:[%s676_s0 + $0x48] sm:$0xff]  ;;  %v83_v32 = vadd.f32 %v40_v29, %v39_v28  ;;  %v26_v36 = vld [vmem:[%s676_s0 + $0x58] sm:$0xff]  ;;  %v41_v37 = vld [vmem:[%s676_s0 + $0xd0] sm:$0xff]  ;;  %v147_v50 = vmax.f32 %v39_v28, %v40_v29  ;;  %v175_v1 = vlaneseq  ;;  %vm180_vm0 = vcmask 130112  }
   0xb   :  { %v59_v34 = vadd.f32 %v24_v31, %v23_v30  ;;  %v42_v38 = vld [vmem:[%s676_s0 + $0xd8] sm:$0xff]  ;;  %v62_v39 = vadd.f32 %v26_v36, %v25_v35  ;;  %v27_v42 = vld [vmem:[%s676_s0 + $0x60] sm:$0xff]  ;;  %v28_v43 = vld [vmem:[%s676_s0 + $0x68] sm:$0xff]  ;;  %v123_v49 = vmax.f32 %v23_v30, %v24_v31  ;;  %v126_v57 = vmax.f32 %v25_v35, %v26_v36 }
   0xc   :  { %75 = vadd.xlane.f32.xlu1 %v74_v15  ;;  %v86_v40 = vadd.f32 %v42_v38, %v41_v37  ;;  %v65_v45 = vadd.f32 %v28_v43, %v27_v42  ;;  %v43_v47 = vld [vmem:[%s676_s0 + $0xe0] sm:$0xff]  ;;  %v44_v48 = vld [vmem:[%s676_s0 + $0xe8] sm:$0xff]  ;;  %v45_v52 = vld [vmem:[%s676_s0 + $0xf0] sm:$0xff]  ;;  %v129_v59 = vmax.f32 %v27_v42, %v28_v43  ;;  %v150_v60 = vmax.f32 %v41_v37, %v42_v38 }
   0xd   :  { %78 = vadd.xlane.f32.xlu2 %v77_v16  ;;  %v89_v51 = vadd.f32 %v44_v48, %v43_v47  ;;  %v46_v53 = vld [vmem:[%s676_s0 + $0xf8] sm:$0xff]  ;;  %v29_v54 = vld [vmem:[%s676_s0 + $0x70] sm:$0xff]  ;;  %v153_v61 = vmax.f32 %v43_v47, %v44_v48  ;;  %v530_v4 = vand.u32 127, %v175_v1  ;;  %vm184_vm1 = vcmask 195712   ;;  %v280_v37 = vld [vmem:[%s677_s1 + $0x28] sm:$0xff] }
   0xe   :  { %51 = vadd.xlane.f32.xlu0 %v50_v17  ;;  %v30_v55 = vld [vmem:[%s676_s0 + $0x78] sm:$0xff]  ;;  %v92_v56 = vadd.f32 %v46_v53, %v45_v52  ;;  %v156_v62 = vmax.f32 %v45_v52, %v46_v53  ;;  %v281_v36 = vld [vmem:[%s677_s1 + $0x30] sm:$0xff]  ;;  %v279_v38 = vld [vmem:[%s677_s1 + $0x20] sm:$0xff]  ;;  %vm188_vm2 = vcmask 261312   ;;  %vm192_vm3 = vcmask 326912  }
   0xf   :  { %v68_v58 = vadd.f32 %v30_v55, %v29_v54  ;;  %v132_v63 = vmax.f32 %v29_v54, %v30_v55  ;;  %v533_v6 = vadd.s32 4294967288, %v530_v4  ;;  %v536_v9 = vadd.s32 4294967280, %v530_v4  ;;  %v277_v43 = vld [vmem:[%s677_s1 + $0x10] sm:$0xff] }
  0x10   :  { %v591_v48 = vadd.s32 4294967272, %v530_v4  ;;  %v596_v53 = vadd.s32 4294967264, %v530_v4  ;;  %vm196_vm4 = vcmask 392512   ;;  %vm200_vm5 = vcmask 458112  }
  0x11   :  { %vm204_vm6 = vcmask 523712   ;;  %vm221_vm7 = vcmask 1041409   ;;  %vm270_vm8 = vcmask 1043459   ;;  %vm273_vm9 = vcmask 1041408  }
  0x12   :  { %vm283_vm10 = vcmask 523264   ;;  %vm313_vm11 = vcmask 1043456   ;;  %vm309_vm12 = vcmask 31744  }
  0x14   :  { %81 = vadd.xlane.f32.xlu1 %v80_v22 }
  0x15   :  { %112 = vmax.xlane.f32.xlu2 %v111_v23 }
  0x16   :  { %57 = vadd.xlane.f32.xlu0 %v56_v24 }
  0x1c   :  { %136 = vmax.xlane.f32.xlu1 %v135_v25 }
  0x1d   :  { %139 = vmax.xlane.f32.xlu2 %v138_v26 }
  0x1e   :  { %115 = vmax.xlane.f32.xlu0 %v114_v27 }
  0x24   :  { %84 = vadd.xlane.f32.xlu1 %v83_v32  ;;  %v282_v32 = vld [vmem:[%s677_s1 + $0x38] sm:$0xff] }
  0x25   :  { %118 = vmax.xlane.f32.xlu2 %v117_v33  ;;  %295 = vmatpush.msra.mxu0 %v282_v32 }
  0x26   :  { %60 = vadd.xlane.f32.xlu0 %v59_v34 }
  0x27   :  { %296 = vmatpush.msra.mxu0 %v281_v36 }
  0x29   :  { %297 = vmatpush.msra.mxu0 %v280_v37 }
  0x2b   :  { %298 = vmatpush.msra.mxu0 %v279_v38 }
  0x2c   :  { %63 = vadd.xlane.f32.xlu1 %v62_v39  ;;  %v278_v39 = vld [vmem:[%s677_s1 + $0x18] sm:$0xff] }
  0x2d   :  { %87 = vadd.xlane.f32.xlu2 %v86_v40  ;;  %299 = vmatpush.msra.mxu0 %v278_v39 }
  0x2e   :  { %142 = vmax.xlane.f32.xlu0 %v141_v41 }
  0x2f   :  { %300 = vmatpush.msra.mxu0 %v277_v43 }
  0x34   :  { %145 = vmax.xlane.f32.xlu1 %v144_v44  ;;  %v276_v44 = vld [vmem:[%s677_s1 + $0x8] sm:$0xff] }
  0x35   :  { %66 = vadd.xlane.f32.xlu2 %v65_v45  ;;  %301 = vmatpush.msra.mxu0 %v276_v44  ;;  %v275_v45 = vld [vmem:[%s677_s1] sm:$0xff] }
  0x36   :  { %121 = vmax.xlane.f32.xlu0 %v120_v46 }
  0x37   :  { %302 = vmatpush.msra.mxu0 %v275_v45 }
  0x3c   :  { %124 = vmax.xlane.f32.xlu1 %v123_v49 }
  0x3d   :  { %148 = vmax.xlane.f32.xlu2 %v147_v50 }
  0x3e   :  { %90 = vadd.xlane.f32.xlu0 %v89_v51 }
  0x44   :  { %93 = vadd.xlane.f32.xlu1 %v92_v56  ;;  %v599_v56 = vadd.s32 4294967256, %v530_v4 }
  0x45   :  { %127 = vmax.xlane.f32.xlu2 %v126_v57 }
  0x46   :  { %69 = vadd.xlane.f32.xlu0 %v68_v58 }
  0x4c   :  { %130 = vmax.xlane.f32.xlu1 %v129_v59 }
  0x4d   :  { %154 = vmax.xlane.f32.xlu2 %v153_v61 }
  0x4e   :  { %151 = vmax.xlane.f32.xlu0 %v150_v60 }
  0x54   :  { %157 = vmax.xlane.f32.xlu1 %v156_v62  ;;  %v604_v62 = vadd.s32 4294967248, %v530_v4 }
  0x56   :  { %133 = vmax.xlane.f32.xlu0 %v132_v63 }
  0x77   :  { %v73_v0 = vpop.xlane.xlu1 %72 }
  0x78   :  { %v55_v2 = vpop.xlane.xlu2 %54  ;;  %v103_v5 = vmul.f32 0.00390625, %v73_v0 }
  0x79   :  { %v49_v3 = vpop.xlane.xlu0 %48  ;;  %v97_v10 = vmul.f32 0.00390625, %v55_v2 }
  0x7a   :  { %v95_v7 = vmul.f32 0.00390625, %v49_v3  ;;  %v206_v15 = vperm.slane %v103_v5, %v530_v4  ;;  %v611_v5 = vadd.s32 4294967240, %v530_v4 }
  0x7b   :  { %v183_v19 = vperm.slane %v97_v10, %v536_v9 }
  0x7c   :  { %v177_v17 = vperm.slane %v95_v7, %v530_v4 }
  0x7f   :  { %v76_v8 = vpop.xlane.xlu1 %75 }
  0x80   :  { %v104_v11 = vmul.f32 0.00390625, %v76_v8  ;;  %v79_v12 = vpop.xlane.xlu2 %78 }
  0x81   :  { %v52_v13 = vpop.xlane.xlu0 %51  ;;  %v105_v46 = vmul.f32 0.00390625, %v79_v12 }
  0x82   :  { %v96_v14 = vmul.f32 0.00390625, %v52_v13  ;;  %v207_v16 = vperm.slane %v104_v11, %v533_v6 }
  0x83   :  { %v209_v58 = vperm.slane %v105_v46, %v536_v9 }
  0x84   :  { %v179_v18 = vperm.slane %v96_v14, %v533_v6  ;;  %v208_v20 = vsel %vm180_vm0, %v207_v16, %v206_v15 }
  0x85   :  { %v210_v7 = vsel %vm184_vm1, %v209_v58, %v208_v20 }
  0x86   :  { %v181_v21 = vsel %vm180_vm0, %v179_v18, %v177_v17 }
  0x87   :  { %v546_v22 = vsel %vm184_vm1, %v183_v19, %v181_v21  ;;  %v82_v23 = vpop.xlane.xlu1 %81 }
  0x88   :  { %v548_v24 = vpop.xlane.xlu2 %112  ;;  %v106_v49 = vmul.f32 0.00390625, %v82_v23 }
  0x89   :  { %v58_v25 = vpop.xlane.xlu0 %57  ;;  %v240_v44 = vperm.slane %v548_v24, %v530_v4 }
  0x8a   :  { %v98_v52 = vmul.f32 0.00390625, %v58_v25  ;;  %v211_v61 = vperm.slane %v106_v49, %v591_v48 }
  0x8c   :  { %v187_v0 = vperm.slane %v98_v52, %v591_v48  ;;  %v212_v12 = vsel %vm188_vm2, %v211_v61, %v210_v7 }
  0x8e   :  { %v189_v17 = vsel %vm188_vm2, %v187_v0, %v546_v22  ;;  %v308_v0 = vld [vmem:[%s678_s2] sm:$0xf]  ;;  %s413_s2 = smov [#allocation2]  }
  0x8f   :  { %v550_v26 = vpop.xlane.xlu1 %136  ;;  %379 = vmatpush.msk.msra.mxu1 %vm313_vm11, %v308_v0  ;;  %s367_s11 = sshll.u32 %s413_s2, 4  ;;  %s368_s11 = int_to_ptr.vmem [resolvable:$true] %s367_s11 }
  0x90   :  { %v552_v27 = vpop.xlane.xlu2 %139 }
  0x91   :  { %v554_v28 = vpop.xlane.xlu0 %115  ;;  %v256_v36 = vperm.slane %v552_v27, %v533_v6 }
  0x92   :  { %v241_v45 = vperm.slane %v554_v28, %v533_v6 }
  0x94   :  { %v242_v24 = vsel %vm180_vm0, %v241_v45, %v240_v44 }
  0x97   :  { %v85_v29 = vpop.xlane.xlu1 %84 }
  0x98   :  { %v556_v30 = vpop.xlane.xlu2 %118  ;;  %v107_v54 = vmul.f32 0.00390625, %v85_v29 }
  0x99   :  { %v61_v31 = vpop.xlane.xlu0 %60  ;;  %v243_v46 = vperm.slane %v556_v30, %v536_v9 }
  0x9a   :  { %v99_v55 = vmul.f32 0.00390625, %v61_v31  ;;  %v213_v1 = vperm.slane %v107_v54, %v596_v53 }
  0x9b   :  { %v244_v30 = vsel %vm184_vm1, %v243_v46, %v242_v24 }
  0x9c   :  { %v191_v2 = vperm.slane %v99_v55, %v596_v53  ;;  %v214_v18 = vsel %vm192_vm3, %v213_v1, %v212_v12 }
  0x9e   :  { %v193_v20 = vsel %vm192_vm3, %v191_v2, %v189_v17 }
  0x9f   :  { %v64_v33 = vpop.xlane.xlu1 %63 }
  0xa0   :  { %v88_v34 = vpop.xlane.xlu2 %87  ;;  %v100_v59 = vmul.f32 0.00390625, %v64_v33 }
  0xa1   :  { %v561_v35 = vpop.xlane.xlu0 %142  ;;  %v108_v57 = vmul.f32 0.00390625, %v88_v34  ;;  %v255_v34 = vperm.slane %v550_v26, %v530_v4 }
  0xa2   :  { %v195_v8 = vperm.slane %v100_v59, %v599_v56  ;;  %v258_v38 = vperm.slane %v561_v35, %v536_v9 }
  0xa3   :  { %v215_v3 = vperm.slane %v108_v57, %v599_v56  ;;  %v257_v27 = vsel %vm180_vm0, %v256_v36, %v255_v34  ;;  %vm360_vm0 = vcmask 517120  }
  0xa4   :  { %v197_v25 = vsel %vm196_vm4, %v195_v8, %v193_v20 }
  0xa5   :  { %v216_v21 = vsel %vm196_vm4, %v215_v3, %v214_v18 }
  0xa7   :  { %v575_v40 = vpop.xlane.xlu1 %145 }
  0xa8   :  { %v67_v41 = vpop.xlane.xlu2 %66 }
  0xa9   :  { %v577_v42 = vpop.xlane.xlu0 %121  ;;  %v101_v63 = vmul.f32 0.00390625, %v67_v41  ;;  %v260_v41 = vperm.slane %v575_v40, %v591_v48  ;;  %v259_v40 = vsel %vm184_vm1, %v258_v38, %v257_v27 }
  0xab   :  { %v199_v13 = vperm.slane %v101_v63, %v604_v62  ;;  %v261_v4 = vsel %vm188_vm2, %v260_v41, %v259_v40 }
  0xad   :  { %v201_v32 = vsel %vm200_vm5, %v199_v13, %v197_v25 }
  0xaf   :  { %v588_v47 = vpop.xlane.xlu1 %124 }
  0xb0   :  { %v593_v50 = vpop.xlane.xlu2 %148  ;;  %v247_v6 = vperm.slane %v588_v47, %v596_v53 }
  0xb1   :  { %v91_v51 = vpop.xlane.xlu0 %90  ;;  %v262_v26 = vperm.slane %v593_v50, %v596_v53 }
  0xb2   :  { %v109_v60 = vmul.f32 0.00390625, %v91_v51  ;;  %v245_v51 = vperm.slane %v577_v42, %v591_v48 }
  0xb3   :  { %v263_v28 = vsel %vm192_vm3, %v262_v26, %v261_v4 }
  0xb4   :  { %v217_v10 = vperm.slane %v109_v60, %v604_v62  ;;  %v246_v42 = vsel %vm188_vm2, %v245_v51, %v244_v30 }
  0xb5   :  { %v248_v55 = vsel %vm192_vm3, %v247_v6, %v246_v42 }
  0xb6   :  { %v218_v29 = vsel %vm200_vm5, %v217_v10, %v216_v21 }
  0xb7   :  { %v94_v11 = vpop.xlane.xlu1 %93 }
  0xb8   :  { %v110_v14 = vmul.f32 0.00390625, %v94_v11  ;;  %v128_v15 = vpop.xlane.xlu2 %127 }
  0xb9   :  { %v70_v16 = vpop.xlane.xlu0 %69  ;;  %v249_v50 = vperm.slane %v128_v15, %v599_v56 }
  0xba   :  { %v102_v19 = vmul.f32 0.00390625, %v70_v16  ;;  %v219_v23 = vperm.slane %v110_v14, %v611_v5 }
  0xbb   :  { %v250_v57 = vsel %vm196_vm4, %v249_v50, %v248_v55 }
  0xbc   :  { %v203_v31 = vperm.slane %v102_v19, %v611_v5  ;;  %v220_v22 = vsel %vm204_vm6, %v219_v23, %v218_v29 }
  0xbe   :  { %v205_v33 = vsel %vm204_vm6, %v203_v31, %v201_v32 }
  0xbf   :  { %v222_v37 = vsel %vm221_vm7, %v220_v22, %v205_v33  ;;  %v131_v39 = vpop.xlane.xlu1 %130 }
  0xc0   :  { %v155_v49 = vpop.xlane.xlu2 %154  ;;  %v251_v52 = vperm.slane %v131_v39, %v604_v62 }
  0xc1   :  { %v152_v43 = vpop.xlane.xlu0 %151  ;;  %v266_v9 = vperm.slane %v155_v49, %v604_v62 }
  0xc2   :  { %v264_v35 = vperm.slane %v152_v43, %v599_v56  ;;  %v252_v59 = vsel %vm200_vm5, %v251_v52, %v250_v57 }
  0xc4   :  { %v265_v54 = vsel %vm196_vm4, %v264_v35, %v263_v28 }
  0xc5   :  { %v267_v56 = vsel %vm200_vm5, %v266_v9, %v265_v54 }
  0xc7   :  { %v158_v48 = vpop.xlane.xlu1 %157 }
  0xc8   :  { %v268_v47 = vperm.slane %v158_v48, %v611_v5 }
  0xc9   :  { %v134_v53 = vpop.xlane.xlu0 %133 }
  0xca   :  { %v253_v58 = vperm.slane %v134_v53, %v611_v5  ;;  %v269_v60 = vsel %vm204_vm6, %v268_v47, %v267_v56 }
  0xcc   :  { %v254_v61 = vsel %vm204_vm6, %v253_v58, %v252_v59 }
  0xcd   :  { %v271_v62 = vsel %vm270_vm8, %v269_v60, %v254_v61 }
  0xce   :  { %v274_v63 = vsel %vm273_vm9, %v222_v37, %v271_v62 }
  0xcf   :  { %378 = vmatmul.msk.f32.vlgmr.msra.gmra.mxu0 %vm283_vm10, %v274_v63 }
 0x14c   :  { %v304_v1 = vpop.f32.mrf.mxu0 }
 0x14d   :  { %v307_v2 = vmax.f32 %v304_v1, 0.0 }
 0x14f   :  { %380 = vmatmul.msk.f32.vlgmr.msra.gmra.mxu1 %vm309_vm12, %v307_v2 }
 0x1cc   :  { %v334_v3 = vpop.f32.mrf.mxu1 }
 0x1cd   :  { %v338_v5 = vrot.slane %v334_v3, 2 }
 0x1cf   :  { %v340_v7 = vadd.f32 %v338_v5, %v334_v3 }
 0x1d1   :  { %v381_v8 = vmul.f32 -1.442695, %v340_v7 }
 0x1d3   :  { %383 = vpow2.f32 %v381_v8 }
 0x1d9   :  { %v384_v10 = vpop.eup %383 }
 0x1da   :  { %v344_v11 = vadd.f32 1.0, %v384_v10 }
 0x1dc   :  { %385 = vrcp.f32 %v344_v11  ;;  %v356_v15 = vand.u32 2147483648, %v344_v11  ;;  %v354_v17 = vand.u32 2147483647, %v344_v11  ;;  %vm350_vm14 = vweird.f32 %v344_v11 }
 0x1de   :  { %v357_v19 = vor.u32 1.1754944e-38, %v356_v15  ;;  %vm355_vm1 = vcmp.eq.f32.partialorder %v354_v17, 8.507059e+37 }
 0x1e2   :  { %v386_v12 = vpop.eup %385 }
 0x1e3   :  { %v346_v13 = vmul.f32 %v386_v12, %v344_v11  ;;  %vm351_vm13 = vweird.f32 %v386_v12 }
 0x1e4   :  { %vm352_vm15 = vmor %vm350_vm14, %vm351_vm13 }
 0x1e5   :  { %v347_v14 = vsub.f32 1.0, %v346_v13 }
 0x1e7   :  { %v348_v16 = vmul.f32 %v386_v12, %v347_v14 }
 0x1e9   :  { %v349_v18 = vadd.f32 %v386_v12, %v348_v16 }
 0x1eb   :  { %v353_v20 = vsel %vm352_vm15, %v386_v12, %v349_v18 }
 0x1ec   :  { %v358_v21 = vsel %vm355_vm1, %v357_v19, %v353_v20 }
 0x1ed   :  { %361 = vst.msk [vmem:[#allocation2] sm:$0x3] %vm360_vm0, %v358_v21 }
 0x1ee   :  { %372 = dma.vmem_to_hbm [thread:$0]  %s368_s11, 32, %s370_s14, [#allocation3]  }
 0x1ef   :  { %411 = dma.done.wait [#allocation3], 32  }
 0x1f0   :  { %412 = vsyncadd [#allocation3], 4294967264 }
 0x1f1   :  { %377 = vsyncpa [#allocation3], 1 }

</bundles_post_ra>
